<compile_context>
chip_gen: v7x
topology: tpu7x:2x2x1
jax: 0.10.0
libtpu: 0.0.40
codegen_flags: <defaults>
</compile_context>

<pallas_src>
import functools

import jax
import jax.numpy as jnp
from jax.experimental import pallas as pl
from jax.experimental.pallas import tpu as pltpu


def _cdiv(a, b):
    return -(-a // b)


def _round_up(a, m):
    return _cdiv(a, m) * m


# ---------------------------------------------------------------------------
# Kernels
# ---------------------------------------------------------------------------
def _epilogue(acc_f32, b_ref, out_ref):
    # Bias add + exact sigmoid: exp rides the EUP; the exact divide keeps the
    # output strictly inside (0, 1) (the approx reciprocal could step outside
    # [0, 1], which is risky for downstream log/logit).  Kernel is mem-bound,
    # so the extra VPU work is free.
    logits = acc_f32 + b_ref[...]
    out_ref[...] = (1.0 / (1.0 + jnp.exp(-logits))).astype(out_ref.dtype)


def _fcn_kernel_resident(x_ref, w_ref, b_ref, out_ref):
    """Whole (padded) K resident in VMEM: one MXU pass per batch tile."""
    # x_ref: (TB, Kp) bf16 | w_ref: (Kp, Np) bf16 | b_ref: (1, Np) f32
    acc = jnp.dot(x_ref[...], w_ref[...], preferred_element_type=jnp.float32)
    _epilogue(acc, b_ref, out_ref)


def _fcn_kernel_ktiled(x_ref, w_ref, b_ref, out_ref, acc_ref):
    """K-tiled fallback for huge fused weights (e.g. v7x's 64 MiB VMEM)."""
    k = pl.program_id(1)

    @pl.when(k == 0)
    def _():
        acc_ref[...] = jnp.zeros_like(acc_ref)

    acc_ref[...] += jnp.dot(x_ref[...], w_ref[...],
                            preferred_element_type=jnp.float32)

    @pl.when(k == pl.num_programs(1) - 1)
    def _():
        _epilogue(acc_ref[...], b_ref, out_ref)


# ---------------------------------------------------------------------------
# One-time parameter preparation (hoisted out of the per-call hot path)
# ---------------------------------------------------------------------------
def prepare_params(params, *, weight_budget_bytes=16 << 20):
    """Fold, pad and cast the weights ONCE.

    Returns (w_bf16_padded, b_f32_padded, n_inp, n_out, k_tile).
    """
    w1, b1, w2, b2 = params
    n_inp, n_hidden = w1.shape
    n_out = w2.shape[1]

    # Exact f32 fold (LeakyReLU(slope=1.0) and Dropout(p=0) are identities).
    # Gate note: the fold only shrinks the weight when n_out <= n_hidden
    # (true here: 16 <= 32); see TODO(synk) at the top for the other case.
    w = (w1 @ w2).astype(jnp.float32)               # (n_inp, n_out)
    b = (b1 @ w2 + b2).astype(jnp.float32)          # (1, n_out)

    # Lane-dense padding: K and N up to multiples of 128.
    kp = _round_up(max(n_inp, 1), 128)
    np_ = _round_up(max(n_out, 1), 128)

    # Concrete K-tiling decision (v7x-safe): keep the double-buffered weight
    # working set under `weight_budget_bytes` of VMEM (16 MiB default, well
    # inside v7x's 64 MiB physical / v5e's 16 MiB default scoped limit).
    nk = max(1, _cdiv(kp * np_ * 2 * 2, weight_budget_bytes))
    k_tile = _round_up(_cdiv(kp, nk), 128)
    kp = k_tile * _cdiv(kp, k_tile)                 # make Kp a multiple of k_tile

    w_pad = jnp.pad(w, ((0, kp - n_inp), (0, np_ - n_out))).astype(jnp.bfloat16)
    b_pad = jnp.pad(b, ((0, 0), (0, np_ - n_out)))  # stays f32 (epilogue precision)
    return w_pad, b_pad, n_inp, n_out, k_tile


# ---------------------------------------------------------------------------
# Forward (hot path, jit-ed)
# ---------------------------------------------------------------------------
@functools.partial(jax.jit, static_argnames=("n_inp", "n_out", "k_tile", "tb"))
def fcn_forward(inp, w, b, out=None, *, n_inp, n_out, k_tile, tb=1024):
    """Replicates FCN.forward(inp, out) -> (inp, out2). `out` is unused."""
    del out
    B = inp.shape[0]
    kp, np_ = w.shape
    nk = kp // k_tile

    # nn.Flatten + single bf16 cast + bf16 padding (no intermediate f32 copies).
    x = inp.reshape(B, -1).astype(jnp.bfloat16)
    assert x.shape[1] == n_inp

    # Batch tile: big enough to amortize the ~0.35 us per-step pipeline
    # overhead, multiple of 8 sublanes, multiple of 256 when large (MXU
    # granule), and capped so there are >=2 grid blocks (v7x's 2 TensorCores).
    tb_eff = max(8, min(tb, _round_up(_cdiv(B, 2), 8), _round_up(B, 8)))
    if tb_eff >= 256:
        tb_eff = (tb_eff // 256) * 256
    B_p = _round_up(B, tb_eff)
    nb = B_p // tb_eff

    x_p = jnp.pad(x, ((0, B_p - B), (0, kp - n_inp)))

    # Explicit scoped-VMEM limit from the tile working set (x/W/out
    # double-buffered, bias padded to 8 sublanes, f32 accumulator), with
    # generous headroom, capped at v7x's 64 MiB physical VMEM.
    vmem_need = (2 * tb_eff * k_tile * 2        # x tile  (bf16, 2 buffers)
                 + 2 * k_tile * np_ * 2         # W tile  (bf16, 2 buffers)
                 + 2 * 8 * np_ * 4              # bias    ((1,Np) -> 8 sublanes)
                 + 2 * tb_eff * np_ * 2         # out tile(bf16, 2 buffers)
                 + tb_eff * np_ * 4)            # f32 accumulator (k-tiled path)
    vmem_limit = int(min(max(2 * vmem_need, 8 << 20), 64 << 20))

    cost = pl.CostEstimate(
        flops=2 * B_p * kp * np_,
        transcendentals=B_p * np_,
        bytes_accessed=(B_p * kp * 2 + kp * np_ * 2 + np_ * 4 + B_p * np_ * 2),
    )
    out_shape = jax.ShapeDtypeStruct((B_p, np_), jnp.bfloat16)

    if nk == 1:
        out_p = pl.pallas_call(
            _fcn_kernel_resident,
            out_shape=out_shape,
            grid=(nb,),
            in_specs=[
                pl.BlockSpec((tb_eff, kp), lambda i: (i, 0)),   # x: batch-tiled
                pl.BlockSpec((kp, np_), lambda i: (0, 0)),      # W: resident
                pl.BlockSpec((1, np_), lambda i: (0, 0)),       # b: resident
            ],
            out_specs=pl.BlockSpec((tb_eff, np_), lambda i: (i, 0)),
            compiler_params=pltpu.CompilerParams(
                dimension_semantics=("parallel",),
                vmem_limit_bytes=vmem_limit),
            cost_estimate=cost,
        )(x_p, w, b)
    else:
        # K-tiled fallback: reduction axis last, "arbitrary", f32 accumulator.
        out_p = pl.pallas_call(
            _fcn_kernel_ktiled,
            out_shape=out_shape,
            grid=(nb, nk),
            in_specs=[
                pl.BlockSpec((tb_eff, k_tile), lambda i, k: (i, k)),
                pl.BlockSpec((k_tile, np_), lambda i, k: (k, 0)),
                pl.BlockSpec((1, np_), lambda i, k: (0, 0)),
            ],
            out_specs=pl.BlockSpec((tb_eff, np_), lambda i, k: (i, 0)),
            scratch_shapes=[pltpu.VMEM((tb_eff, np_), jnp.float32)],
            compiler_params=pltpu.CompilerParams(
                dimension_semantics=("parallel", "arbitrary"),
                vmem_limit_bytes=vmem_limit),
            cost_estimate=cost,
        )(x_p, w, b)

    # Slice off padding; upcast the (small) result to f32 for module parity.
    out2 = out_p[:B, :n_out].astype(jnp.float32)
    return inp, out2


# ---------------------------------------------------------------------------
# Parameter init (mimics nn.Linear's U(-1/sqrt(fan_in), 1/sqrt(fan_in)))
# ---------------------------------------------------------------------------
def init_params(key, n_inp, n_hidden, n_out):
    k1, k2, k3, k4 = jax.random.split(key, 4)
    bound1 = 1.0 / jnp.sqrt(jnp.float32(n_inp))
    bound2 = 1.0 / jnp.sqrt(jnp.float32(n_hidden))
    # Stored pre-transposed: (in_features, out_features)
    w1 = jax.random.uniform(k1, (n_inp, n_hidden), jnp.float32, -bound1, bound1)
    b1 = jax.random.uniform(k2, (1, n_hidden), jnp.float32, -bound1, bound1)
    w2 = jax.random.uniform(k3, (n_hidden, n_out), jnp.float32, -bound2, bound2)
    b2 = jax.random.uniform(k4, (1, n_out), jnp.float32, -bound2, bound2)
    return w1, b1, w2, b2


if __name__ == "__main__":
    # Small shapes: batch=2, per-sample input (4, 16) -> n_inp=64,
    # n_hidden=32, n_out=16.
    B, C, L = 2, 4, 16
    n_inp, n_hidden, n_out = C * L, 32, 16

    key = jax.random.PRNGKey(0)
    kx, kp = jax.random.split(key)
    inp = jax.random.normal(kx, (B, C, L), dtype=jnp.float32)
    params = init_params(kp, n_inp, n_hidden, n_out)

    # One-time preparation, outside the per-call hot path.
    w_f, b_f, n_inp_p, n_out_p, k_tile = prepare_params(params)

    inp_out, out2 = fcn_forward(inp, w_f, b_f,
                                n_inp=n_inp_p, n_out=n_out_p, k_tile=k_tile)
    jax.block_until_ready(out2)

    # Pure-JAX f32 reference of the original (unfused) network.
    x = inp.reshape(B, -1)
    h = x @ params[0] + params[1]
    h = jnp.where(h >= 0, h, 1.0 * h)          # LeakyReLU(negative_slope=True==1.0)
    ref = jax.nn.sigmoid(h @ params[2] + params[3])

    assert out2.shape == (B, n_out)
    assert inp_out.shape == inp.shape
    assert jnp.allclose(inp_out, inp)
    # Tolerance covers bf16 fused-weight operands + bf16 output rounding.
    assert jnp.allclose(out2, ref, atol=2e-2, rtol=2e-2)

    print("KERNEL_OK")
</pallas_src>

<mosaic_0001>
module attributes {stable_mosaic.version = 11 : i64} {
  func.func @_fcn_kernel_resident(%arg0: i32, %arg1: memref<8x128xbf16, #tpu.memory_space<vmem>>, %arg2: memref<128x128xbf16, #tpu.memory_space<vmem>>, %arg3: memref<1x128xf32, #tpu.memory_space<vmem>>, %arg4: memref<8x128xbf16, #tpu.memory_space<vmem>>) attributes {dimension_semantics = [#tpu.dimension_semantics<parallel>], iteration_bounds = array<i64: 1>, scalar_prefetch = 0 : i64, scratch_operands = 0 : i64, tpu.core_type = #tpu.core_type<tc>, window_params = [{transform_indices = @transform_0, window_bounds = array<i64: 8, 128>}, {pipeline_mode = #tpu.pipeline_mode<synchronous>, transform_indices = @transform_1, window_bounds = array<i64: 128, 128>}, {pipeline_mode = #tpu.pipeline_mode<synchronous>, transform_indices = @transform_2, window_bounds = array<i64: 1, 128>}, {transform_indices = @transform_3, window_bounds = array<i64: 8, 128>}]} {
    %c0 = arith.constant 0 : index
    %c0_0 = arith.constant 0 : index
    %0 = vector.load %arg1[%c0, %c0_0] : memref<8x128xbf16, #tpu.memory_space<vmem>>, vector<8x128xbf16>
    %c0_1 = arith.constant 0 : index
    %c0_2 = arith.constant 0 : index
    %1 = vector.load %arg2[%c0_1, %c0_2] : memref<128x128xbf16, #tpu.memory_space<vmem>>, vector<128x128xbf16>
    %cst = arith.constant dense<0.000000e+00> : vector<8x128xf32>
    %2 = tpu.matmul %0, %1, %cst {dimension_numbers = #tpu.dot_dimension_numbers<[1], [0], [0], [1], [0, 0, 1, 1], [], []>} : vector<8x128xbf16>, vector<128x128xbf16>, vector<8x128xf32> -> vector<8x128xf32>
    %c0_3 = arith.constant 0 : index
    %c0_4 = arith.constant 0 : index
    %3 = vector.load %arg3[%c0_3, %c0_4] : memref<1x128xf32, #tpu.memory_space<vmem>>, vector<1x128xf32>
    %4 = vector.broadcast %3 : vector<1x128xf32> to vector<8x128xf32>
    %5 = arith.addf %2, %4 : vector<8x128xf32>
    %cst_5 = arith.constant 0.000000e+00 : f32
    %6 = vector.broadcast %cst_5 : f32 to vector<8x128xf32>
    %7 = arith.subf %6, %5 : vector<8x128xf32>
    %8 = math.exp %7 : vector<8x128xf32>
    %cst_6 = arith.constant 1.000000e+00 : f32
    %9 = vector.broadcast %cst_6 : f32 to vector<8x128xf32>
    %10 = arith.addf %9, %8 : vector<8x128xf32>
    %cst_7 = arith.constant 1.000000e+00 : f32
    %11 = vector.broadcast %cst_7 : f32 to vector<8x128xf32>
    %12 = arith.divf %11, %10 : vector<8x128xf32>
    %13 = arith.truncf %12 : vector<8x128xf32> to vector<8x128xbf16>
    %c0_8 = arith.constant 0 : index
    %c0_9 = arith.constant 0 : index
    %14 = vector.load %arg4[%c0_8, %c0_9] : memref<8x128xbf16, #tpu.memory_space<vmem>>, vector<8x128xbf16>
    tpu.vector_store %arg4[%c0_8, %c0_9], %13 {strides = array<i32>} : memref<8x128xbf16, #tpu.memory_space<vmem>>, vector<8x128xbf16>,
    return
  }
  func.func @transform_0(%arg0: i32) -> (i32, i32) {
    %c0_i32 = arith.constant 0 : i32
    %c0_i32_0 = arith.constant 0 : i32
    return %arg0, %c0_i32 : i32, i32
  }
  func.func @transform_1(%arg0: i32) -> (i32, i32) {
    %c0_i32 = arith.constant 0 : i32
    %c0_i32_0 = arith.constant 0 : i32
    %c0_i32_1 = arith.constant 0 : i32
    return %c0_i32, %c0_i32_0 : i32, i32
  }
  func.func @transform_2(%arg0: i32) -> (i32, i32) {
    %c0_i32 = arith.constant 0 : i32
    %c0_i32_0 = arith.constant 0 : i32
    %c0_i32_1 = arith.constant 0 : i32
    return %c0_i32, %c0_i32_0 : i32, i32
  }
  func.func @transform_3(%arg0: i32) -> (i32, i32) {
    %c0_i32 = arith.constant 0 : i32
    %c0_i32_0 = arith.constant 0 : i32
    return %arg0, %c0_i32 : i32, i32
  }
}

</mosaic_0001>

<bundles_post_ra>
// kernel: fcn_forward.1
= control target key start
LH: loop header
LB: loop body
LE: loop exit
PB: predicated region body
PF: predicated region fallthrough
CT: control target
= control target key end

     0   :  { %8 = vsyncpa [#allocation3], 0  ;;  %s233_s12 = smov [#allocation2]   ;;  %s279_s0 = inlined_call_operand.vmem [shape: bf16[8,128], index: 0, kind: input, shape index: {}]   ;;  %s280_s1 = inlined_call_operand.hbm [shape: bf16[128,128], index: 1, kind: input, shape index: {}]   ;;  %s281_s2 = inlined_call_operand.vmem [shape: f32[1,128], index: 2, kind: input, shape index: {}]   ;;  %s282_s3 = inlined_call_operand.vmem [shape: bf16[8,128], index: 3, kind: output, shape index: {}]  }
   0x1   :  { %s16_s13 = sshll.u32 %s233_s12, 4  ;;  %s209_s16 = scalar_lea.hbm %s280_s1, 1024  ;;  %s17_s13 = int_to_ptr.vmem [resolvable:$true] %s16_s13 }
   0x2   :  { %p210_p0 = scmp.ne.s32.totalorder %s280_s1, %s209_s16  ;;  %p213_p1 = scmp.lt.u32.totalorder %s209_s16, %s280_s1 }
   0x4   :  { %p215_p2 = pnand %p213_p1, %p210_p0 }
   0x6   :  { %218 = shalt.err (!%p215_p2)
}
   0x7   :  { %s219_s21 = scalar_lea.vmem %s17_s13, 1024  ;;  %p224_p4 = scmp.lt.s32.totalorder %s17_s13, %s17_s13 }
   0x8   :  { %p220_p3 = scmp.ne.s32.totalorder %s17_s13, %s219_s21  ;;  %p225_p5 = scmp.lt.s32.totalorder %s219_s21, %s219_s21 }
   0xa   :  { %p226_p6 = por %p225_p5, %p224_p4 }
   0xc   :  { %p227_p7 = pnand %p226_p6, %p220_p3 }
   0xe   :  { %230 = shalt.err (!%p227_p7)
}
   0xf   :  { %s234_s22 = smov 64   ;;  %s235_s23 = smov 4  }
  0x10   :  { %22 = dma.hbm_to_vmem [thread:$0]  %s280_s1, 1024, %s17_s13, [#allocation3], %s234_s22, %s234_s22, %s235_s23  }
  0x11   :  { %231 = dma.done.wait [#allocation3], 1024  }
  0x12   :  { %232 = vsyncadd [#allocation3], 4294966272  ;;  %v236_v0 = vmov 0.0   ;;  %vm237_vm0 = vmmov 0   ;;  %v197_v1 = vld [vmem:[#allocation2] sm:$0xff]   ;;  %v198_v2 = vld [vmem:[#allocation2 + $0x8] sm:$0xff]  }
  0x13   :  { %172 = vmatprep.subr.bf16.mxu0 %v236_v0  ;;  %188 = vmatprep.mubr.msk.bf16.mxu0 %vm237_vm0, %v236_v0  ;;  %v199_v3 = vld [vmem:[#allocation2 + $0x10] sm:$0xff]   ;;  %v200_v4 = vld [vmem:[#allocation2 + $0x18] sm:$0xff]   ;;  %v201_v5 = vld [vmem:[#allocation2 + $0x20] sm:$0xff]  }
  0x14   :  { %173 = vmatpush3.bf16.msra.mxu0 %v197_v1  ;;  %v202_v6 = vld [vmem:[#allocation2 + $0x28] sm:$0xff]   ;;  %v203_v7 = vld [vmem:[#allocation2 + $0x30] sm:$0xff]   ;;  %v204_v8 = vld [vmem:[#allocation2 + $0x38] sm:$0xff]  }
  0x15   :  { %174 = vmatprep.subr.bf16.mxu0 %v236_v0  ;;  %v29_v9 = vld [vmem:[%s279_s0] sm:$0xf] }
  0x16   :  { %v154_v10 = vld [vmem:[%s281_s2] ss:$0 sm:$0xff] }
  0x18   :  { %175 = vmatpush3.bf16.msra.mxu0 %v198_v2 }
  0x19   :  { %176 = vmatprep.subr.bf16.mxu0 %v236_v0 }
  0x1c   :  { %177 = vmatpush3.bf16.msra.mxu0 %v199_v3 }
  0x1d   :  { %178 = vmatprep.subr.bf16.mxu0 %v236_v0 }
  0x20   :  { %179 = vmatpush3.bf16.msra.mxu0 %v200_v4 }
  0x21   :  { %180 = vmatprep.subr.bf16.mxu0 %v236_v0 }
  0x24   :  { %181 = vmatpush3.bf16.msra.mxu0 %v201_v5 }
  0x25   :  { %182 = vmatprep.subr.bf16.mxu0 %v236_v0 }
  0x28   :  { %183 = vmatpush3.bf16.msra.mxu0 %v202_v6 }
  0x29   :  { %184 = vmatprep.subr.bf16.mxu0 %v236_v0 }
  0x2c   :  { %185 = vmatpush3.bf16.msra.mxu0 %v203_v7 }
  0x2d   :  { %186 = vmatprep.subr.bf16.mxu0 %v236_v0 }
  0x30   :  { %187 = vmatpush3.bf16.msra.mxu0 %v204_v8 }
  0x33   :  { %189 = vmatmul.mubr.bf16.vlgmr.msra.gmra.mrb[0].mxu0 %v29_v9 }
 0x106   :  { %v135_v11 = vpop.f32.mrb[0].mxu0 }
 0x107   :  { %v136_v12 = vadd.f32 %v154_v10, %v135_v11  ;;  %v190_v13 = vpop.f32.mrb[1].mxu0 }
 0x108   :  { %v138_v14 = vpop.f32.mrb[2].mxu0 }
 0x109   :  { %v141_v15 = vsub.f32 0.0, %v136_v12  ;;  %v191_v16 = vpop.f32.mrb[3].mxu0 }
 0x10b   :  { %v142_v17 = vmul.f32 1.442695, %v141_v15 }
 0x10d   :  { %205 = vpow2.f32 %v142_v17 }
 0x117   :  { %v206_v18 = vpop.eup %205 }
 0x118   :  { %v144_v19 = vadd.f32 1.0, %v206_v18 }
 0x11a   :  { %207 = vrcp.f32 %v144_v19 }
 0x124   :  { %v208_v20 = vpop.eup %207 }
 0x125   :  { %v147_v21 = vpack.c.bf16 %v208_v20, %v208_v20 }
 0x127   :  { %148 = vst [vmem:[%s282_s3] sm:$0xf] %v147_v21 }
 0x128   :  { %153 = vsyncpa [#allocation3], 1 }

</bundles_post_ra>
